<compile_context>
chip_gen: v7x
topology: tpu7x:2x2x1
jax: 0.10.0
libtpu: 0.0.40
codegen_flags: <defaults>
</compile_context>

<pallas_src>
import functools

import jax
import jax.numpy as jnp
from jax import lax
from jax.experimental import pallas as pl
from jax.experimental.pallas import tpu as pltpu

_EPS = 1e-06


def _content_address_kernel(*refs, has_mask, mask_min, disable_content_norm,
                            disable_key_masking):
    if has_mask:
        betas_ref, mem_ref, keys_ref, mask_ref, out_ref = refs
    else:
        betas_ref, mem_ref, keys_ref, out_ref = refs
        mask_ref = None

    mem = mem_ref[0]        # (W, N) float32  -- memory^T for this batch
    keys = keys_ref[0]      # (H, W) float32
    betas = betas_ref[0]    # (H, 1) float32

    if has_mask:
        msk = mask_ref[0]   # (H, W) float32
        if mask_min != 0.0:
            msk = msk * (1.0 - mask_min) + mask_min
        if disable_key_masking:
            key_for_norm = keys                 # reference: key norm uses unmasked key
            lhs_dots = keys * msk               # mask folded from the memory side
        else:
            key_m = keys * msk
            key_for_norm = key_m
            lhs_dots = key_m * msk              # key * msk^2
    else:
        msk = None
        key_for_norm = keys
        lhs_dots = keys

    # Stacked score matmul: (H, W) x (W, N) -> (H, N) on the MXU.
    dots = lax.dot_general(lhs_dots, mem, (((1,), (0,)), ((), ())),
                           preferred_element_type=jnp.float32)

    # Key norms (H, 1)
    key_norm = jnp.sqrt(jnp.sum(key_for_norm * key_for_norm, axis=-1,
                                keepdims=True))

    if not disable_content_norm:
        mem_sq = mem * mem                      # (W, N), computed once per batch
        if has_mask:
            # ||mem_row * mask||^2 per (head, slot): (H, W) x (W, N) on the MXU
            lhs_nsq = msk * msk                 # (H, W)
            mem_norm_sq = lax.dot_general(lhs_nsq, mem_sq,
                                          (((1,), (0,)), ((), ())),
                                          preferred_element_type=jnp.float32)
        else:
            # No mask: plain per-slot memory norm; cheap cross-sublane sum (XLU).
            mem_norm_sq = jnp.sum(mem_sq, axis=0, keepdims=True)  # (1, N)
        norm = key_norm * jnp.sqrt(mem_norm_sq)  # (H, N) (broadcast if no mask)
    else:
        norm = key_norm                          # (H, 1)

    scores = dots / (norm + _EPS) * betas        # (H, N)

    # Numerically-stable softmax over N (lane axis).
    m = jnp.max(scores, axis=-1, keepdims=True)
    e = jnp.exp(scores - m)
    p = e / jnp.sum(e, axis=-1, keepdims=True)   # (H, N)

    out_ref[0] = p.astype(out_ref.dtype)


def content_address_generator(memory, keys, betas, mask=None, *,
                              disable_content_norm=False, mask_min=0.0,
                              disable_key_masking=False):
    """Pallas implementation of ContentAddressGenerator.forward."""
    single_head = keys.ndim == 2
    if single_head:
        keys = keys[:, None, :]
        if betas.ndim == 1:
            betas = betas[:, None]
        if mask is not None:
            mask = mask[:, None, :]

    memory = memory.astype(jnp.float32)
    keys = keys.astype(jnp.float32)
    betas = betas.astype(jnp.float32)

    B, N, W = memory.shape
    _, H, _ = keys.shape
    has_mask = mask is not None

    # Present the MXU RHS as (W, N): contraction over the leading RHS axis,
    # lane-dense (H, N) result, no in-kernel transpose.
    mem_t = jnp.swapaxes(memory, 1, 2)           # (B, W, N)
    betas3 = betas.reshape(B, H, 1)              # per-head scalars as a tiny VMEM block

    kernel = functools.partial(
        _content_address_kernel,
        has_mask=has_mask,
        mask_min=float(mask_min),
        disable_content_norm=bool(disable_content_norm),
        disable_key_masking=bool(disable_key_masking),
    )

    in_specs = [
        pl.BlockSpec((1, H, 1), lambda b: (b, 0, 0)),   # betas    (B, H, 1)
        pl.BlockSpec((1, W, N), lambda b: (b, 0, 0)),   # memory^T (B, W, N)
        pl.BlockSpec((1, H, W), lambda b: (b, 0, 0)),   # keys     (B, H, W)
    ]
    args = [betas3, mem_t, keys]
    if has_mask:
        in_specs.append(pl.BlockSpec((1, H, W), lambda b: (b, 0, 0)))  # mask
        args.append(mask.astype(jnp.float32))

    out = pl.pallas_call(
        kernel,
        out_shape=jax.ShapeDtypeStruct((B, H, N), jnp.float32),
        grid=(B,),
        in_specs=in_specs,
        out_specs=pl.BlockSpec((1, H, N), lambda b: (b, 0, 0)),
        compiler_params=pltpu.CompilerParams(
            dimension_semantics=("parallel",)),
    )(*args)

    return out[:, 0] if single_head else out


def _reference_jax(memory, keys, betas, mask=None, *, disable_content_norm=False,
                   mask_min=0.0, disable_key_masking=False):
    """Pure-JAX transcription of the PyTorch forward, for verification."""
    if mask is not None and mask_min != 0:
        mask = mask * (1.0 - mask_min) + mask_min
    single_head = keys.ndim == 2
    if single_head:
        keys = keys[:, None, :]
        if betas.ndim == 1:
            betas = betas[:, None]
        if mask is not None:
            mask = mask[:, None, :]
    memory = memory[:, None]                 # (B, 1, N, W)
    keys = keys[:, :, None, :]               # (B, H, 1, W)
    if mask is not None:
        mask = mask[:, :, None, :]           # (B, H, 1, W)
        memory = memory * mask
        if not disable_key_masking:
            keys = keys * mask
    norm = jnp.linalg.norm(keys, axis=-1)    # (B, H, 1)
    if not disable_content_norm:
        norm = norm * jnp.linalg.norm(memory, axis=-1)   # (B, H, N)
    scores = jnp.sum(memory * keys, axis=-1) / (norm + _EPS)
    scores = scores * betas[..., None]
    res = jax.nn.softmax(scores, axis=-1)
    return res[:, 0] if single_head else res


def _check(name, out, ref):
    out = jax.block_until_ready(out)
    err = float(jnp.max(jnp.abs(out - ref)))
    assert out.shape == ref.shape, f"{name}: shape {out.shape} vs {ref.shape}"
    assert jnp.allclose(out, ref, atol=2e-5, rtol=1e-5), (
        f"{name}: max abs diff {err}")


if __name__ == "__main__":
    key = jax.random.PRNGKey(0)
    k_mem, k_keys, k_beta, k_mask = jax.random.split(key, 4)

    B, H, N, W = 2, 4, 128, 32
    memory = jax.random.normal(k_mem, (B, N, W), jnp.float32)
    keys = jax.random.normal(k_keys, (B, H, W), jnp.float32)
    betas = jax.nn.softplus(jax.random.normal(k_beta, (B, H), jnp.float32)) + 1.0
    mask = jax.nn.sigmoid(jax.random.normal(k_mask, (B, H, W), jnp.float32))

    # 1) multi-head, masked, mask_min rescaling
    cfg = dict(disable_content_norm=False, mask_min=0.1, disable_key_masking=False)
    _check("masked",
           content_address_generator(memory, keys, betas, mask, **cfg),
           _reference_jax(memory, keys, betas, mask, **cfg))

    # 2) multi-head, no mask (specialized trace-time path: no mask DMA/math)
    cfg = dict(disable_content_norm=False, mask_min=0.0, disable_key_masking=False)
    _check("no_mask",
           content_address_generator(memory, keys, betas, None, **cfg),
           _reference_jax(memory, keys, betas, None, **cfg))

    # 3) multi-head, masked, content norm + key masking disabled
    cfg = dict(disable_content_norm=True, mask_min=0.1, disable_key_masking=True)
    _check("flags",
           content_address_generator(memory, keys, betas, mask, **cfg),
           _reference_jax(memory, keys, betas, mask, **cfg))

    # 4) single-head path
    cfg = dict(disable_content_norm=False, mask_min=0.1, disable_key_masking=False)
    _check("single_head",
           content_address_generator(memory, keys[:, 0], betas[:, 0], mask[:, 0], **cfg),
           _reference_jax(memory, keys[:, 0], betas[:, 0], mask[:, 0], **cfg))

    print("KERNEL_OK")
</pallas_src>

<mosaic_0001>
module attributes {stable_mosaic.version = 11 : i64} {
  func.func @_content_address_kernel(%arg0: i32, %arg1: memref<1x4x1xf32, #tpu.memory_space<vmem>>, %arg2: memref<1x32x128xf32, #tpu.memory_space<vmem>>, %arg3: memref<1x4x32xf32, #tpu.memory_space<vmem>>, %arg4: memref<1x4x32xf32, #tpu.memory_space<vmem>>, %arg5: memref<1x4x128xf32, #tpu.memory_space<vmem>>) attributes {dimension_semantics = [#tpu.dimension_semantics<parallel>], iteration_bounds = array<i64: 2>, scalar_prefetch = 0 : i64, scratch_operands = 0 : i64, tpu.core_type = #tpu.core_type<tc>, window_params = [{transform_indices = @transform_0, window_bounds = array<i64: 1, 4, 1>}, {transform_indices = @transform_1, window_bounds = array<i64: 1, 32, 128>}, {transform_indices = @transform_2, window_bounds = array<i64: 1, 4, 32>}, {transform_indices = @transform_3, window_bounds = array<i64: 1, 4, 32>}, {transform_indices = @transform_4, window_bounds = array<i64: 1, 4, 128>}]} {
    %c0 = arith.constant 0 : index
    %c0_0 = arith.constant 0 : index
    %c0_1 = arith.constant 0 : index
    %0 = vector.load %arg2[%c0, %c0_0, %c0_1] : memref<1x32x128xf32, #tpu.memory_space<vmem>>, vector<1x32x128xf32>
    %1 = vector.shape_cast %0 : vector<1x32x128xf32> to vector<32x128xf32>
    %c0_2 = arith.constant 0 : index
    %c0_3 = arith.constant 0 : index
    %c0_4 = arith.constant 0 : index
    %2 = vector.load %arg3[%c0_2, %c0_3, %c0_4] : memref<1x4x32xf32, #tpu.memory_space<vmem>>, vector<1x4x32xf32>
    %3 = vector.shape_cast %2 : vector<1x4x32xf32> to vector<4x32xf32>
    %c0_5 = arith.constant 0 : index
    %c0_6 = arith.constant 0 : index
    %c0_7 = arith.constant 0 : index
    %4 = vector.load %arg1[%c0_5, %c0_6, %c0_7] : memref<1x4x1xf32, #tpu.memory_space<vmem>>, vector<1x4x1xf32>
    %5 = vector.shape_cast %4 : vector<1x4x1xf32> to vector<4x1xf32>
    %c0_8 = arith.constant 0 : index
    %c0_9 = arith.constant 0 : index
    %c0_10 = arith.constant 0 : index
    %6 = vector.load %arg4[%c0_8, %c0_9, %c0_10] : memref<1x4x32xf32, #tpu.memory_space<vmem>>, vector<1x4x32xf32>
    %7 = vector.shape_cast %6 : vector<1x4x32xf32> to vector<4x32xf32>
    %cst = arith.constant 0.899999976 : f32
    %8 = vector.broadcast %cst : f32 to vector<4x32xf32>
    %9 = arith.mulf %7, %8 : vector<4x32xf32>
    %cst_11 = arith.constant 1.000000e-01 : f32
    %10 = vector.broadcast %cst_11 : f32 to vector<4x32xf32>
    %11 = arith.addf %9, %10 : vector<4x32xf32>
    %12 = arith.mulf %3, %11 : vector<4x32xf32>
    %13 = arith.mulf %12, %11 : vector<4x32xf32>
    %cst_12 = arith.constant dense<0.000000e+00> : vector<4x128xf32>
    %14 = tpu.matmul %13, %1, %cst_12 {dimension_numbers = #tpu.dot_dimension_numbers<[1], [0], [0], [1], [0, 0, 1, 1], [], []>} : vector<4x32xf32>, vector<32x128xf32>, vector<4x128xf32> -> vector<4x128xf32>
    %15 = arith.mulf %12, %12 : vector<4x32xf32>
    %cst_13 = arith.constant dense<0.000000e+00> : vector<4xf32>
    %16 = vector.multi_reduction <add>, %15, %cst_13 [1] : vector<4x32xf32> to vector<4xf32>
    %17 = vector.shape_cast %16 : vector<4xf32> to vector<4x1xf32>
    %18 = math.sqrt %17 : vector<4x1xf32>
    %19 = arith.mulf %1, %1 : vector<32x128xf32>
    %20 = arith.mulf %11, %11 : vector<4x32xf32>
    %cst_14 = arith.constant dense<0.000000e+00> : vector<4x128xf32>
    %21 = tpu.matmul %20, %19, %cst_14 {dimension_numbers = #tpu.dot_dimension_numbers<[1], [0], [0], [1], [0, 0, 1, 1], [], []>} : vector<4x32xf32>, vector<32x128xf32>, vector<4x128xf32> -> vector<4x128xf32>
    %22 = math.sqrt %21 : vector<4x128xf32>
    %23 = vector.broadcast %18 : vector<4x1xf32> to vector<4x128xf32>
    %24 = arith.mulf %23, %22 : vector<4x128xf32>
    %cst_15 = arith.constant 9.99999997E-7 : f32
    %25 = vector.broadcast %cst_15 : f32 to vector<4x128xf32>
    %26 = arith.addf %24, %25 : vector<4x128xf32>
    %27 = arith.divf %14, %26 : vector<4x128xf32>
    %28 = vector.broadcast %5 : vector<4x1xf32> to vector<4x128xf32>
    %29 = arith.mulf %27, %28 : vector<4x128xf32>
    %cst_16 = arith.constant dense<0xFF800000> : vector<4xf32>
    %30 = vector.multi_reduction <maximumf>, %29, %cst_16 [1] : vector<4x128xf32> to vector<4xf32>
    %31 = vector.shape_cast %30 : vector<4xf32> to vector<4x1xf32>
    %32 = vector.broadcast %31 : vector<4x1xf32> to vector<4x128xf32>
    %33 = arith.subf %29, %32 : vector<4x128xf32>
    %34 = math.exp %33 : vector<4x128xf32>
    %cst_17 = arith.constant dense<0.000000e+00> : vector<4xf32>
    %35 = vector.multi_reduction <add>, %34, %cst_17 [1] : vector<4x128xf32> to vector<4xf32>
    %36 = vector.shape_cast %35 : vector<4xf32> to vector<4x1xf32>
    %37 = vector.broadcast %36 : vector<4x1xf32> to vector<4x128xf32>
    %38 = arith.divf %34, %37 : vector<4x128xf32>
    %c0_18 = arith.constant 0 : index
    %c0_19 = arith.constant 0 : index
    %c0_20 = arith.constant 0 : index
    %39 = vector.load %arg5[%c0_18, %c0_19, %c0_20] : memref<1x4x128xf32, #tpu.memory_space<vmem>>, vector<1x4x128xf32>
    %40 = vector.shape_cast %39 : vector<1x4x128xf32> to vector<4x128xf32>
    %41 = vector.shape_cast %38 : vector<4x128xf32> to vector<1x4x128xf32>
    tpu.vector_store %arg5[%c0_18, %c0_19, %c0_20], %41 {strides = array<i32>} : memref<1x4x128xf32, #tpu.memory_space<vmem>>, vector<1x4x128xf32>,
    return
  }
  func.func @transform_0(%arg0: i32) -> (i32, i32, i32) {
    %c0_i32 = arith.constant 0 : i32
    %c0_i32_0 = arith.constant 0 : i32
    %c0_i32_1 = arith.constant 0 : i32
    return %arg0, %c0_i32, %c0_i32_0 : i32, i32, i32
  }
  func.func @transform_1(%arg0: i32) -> (i32, i32, i32) {
    %c0_i32 = arith.constant 0 : i32
    %c0_i32_0 = arith.constant 0 : i32
    %c0_i32_1 = arith.constant 0 : i32
    return %arg0, %c0_i32, %c0_i32_0 : i32, i32, i32
  }
  func.func @transform_2(%arg0: i32) -> (i32, i32, i32) {
    %c0_i32 = arith.constant 0 : i32
    %c0_i32_0 = arith.constant 0 : i32
    %c0_i32_1 = arith.constant 0 : i32
    return %arg0, %c0_i32, %c0_i32_0 : i32, i32, i32
  }
  func.func @transform_3(%arg0: i32) -> (i32, i32, i32) {
    %c0_i32 = arith.constant 0 : i32
    %c0_i32_0 = arith.constant 0 : i32
    %c0_i32_1 = arith.constant 0 : i32
    return %arg0, %c0_i32, %c0_i32_0 : i32, i32, i32
  }
  func.func @transform_4(%arg0: i32) -> (i32, i32, i32) {
    %c0_i32 = arith.constant 0 : i32
    %c0_i32_0 = arith.constant 0 : i32
    %c0_i32_1 = arith.constant 0 : i32
    return %arg0, %c0_i32, %c0_i32_0 : i32, i32, i32
  }
}

</mosaic_0001>

<bundles_post_ra>
// kernel: tpu_custom_call.1
= control target key start
LH: loop header
LB: loop body
LE: loop exit
PB: predicated region body
PF: predicated region fallthrough
CT: control target
= control target key end

     0   :  { %9 = vsyncpa [#allocation3], 0  ;;  %s1026_s0 = inlined_call_operand.vmem [shape: f32[2,4,1], index: 0, kind: input, shape index: {}]   ;;  %s1027_s1 = inlined_call_operand.hbm [shape: f32[2,32,128], index: 1, kind: input, shape index: {}]   ;;  %s1028_s2 = inlined_call_operand.vmem [shape: f32[2,4,32], index: 2, kind: input, shape index: {}]   ;;  %s1029_s3 = inlined_call_operand.vmem [shape: f32[2,4,32], index: 3, kind: input, shape index: {}]   ;;  %s1030_s4 = inlined_call_operand.hbm [shape: f32[2,4,128], index: 4, kind: output, shape index: {}]  }
   0x1   :  { %11 = vsyncpa [#allocation3 + $0x1], 0 }
   0x2   :  { %12 = vsyncpa [#allocation4], 0 }
   0x3   :  { %14 = vsyncpa [#allocation4 + $0x1], 0  ;;  %s849_s15 = smov 0   ;;  %s851_s16 = smov 0  }
   0x4   :  { %s853_s17 = smov 0   ;;  %s855_s18 = smov 0  }
   0x5 LB: > { %s870_s19 = sadd.s32 4294967295, %s814_s18   ;;  %s592_s20 = sadd.s32 4294967294, %s814_s18   ;;  %s814_s18 = sphi %s855_s18, %s1043_s18   ;;  %s810_s17 = sphi %s853_s17, %s1042_s17   ;;  %s806_s16 = sphi %s851_s16, %s1041_s16   ;;  %s802_s15 = sphi %s849_s15, %s1040_s15  }
   0x6   : > { %s874_s21 = sadd.s32 1, %s814_s18   ;;  %s53_s22 = sadd.s32 1, %s810_s17 }
   0x7   : > { %s50_s23 = ssub.s32 %s814_s18, %s874_s21  ;;  %p60_p0 = scmp.ne.s32.totalorder %s810_s17, %s806_s16 }
   0x8   : > { %p51_p1 = scmp.eq.s32.totalorder %s50_s23, 0  ;;  %p61_p2 = scmp.eq.s32.totalorder %s814_s18, 0 }
   0x9   : > { %p66_p3 = scmp.ne.s32.totalorder %s806_s16, %s802_s15  ;;  %p67_p4 = scmp.eq.s32.totalorder %s870_s19, 0 }
   0xa   : > { %s886_s24 = scalar_select %p51_p1, %s810_s17, %s53_s22  }
   0xb   : > { %p888_p5 = por %p61_p2, %p60_p0  ;;  %p892_p6 = por %p67_p4, %p66_p3 }
   0xc   : > { %p142_p7 = scmp.eq.s32.totalorder %s870_s19, 1  ;;  %p148_p8 = scmp.eq.s32.totalorder %s592_s20, 1 }
   0xd   : > { %p667_p10 = scmp.lt.s32.totalorder %s814_s18, 2  ;;  %s175_s29 = sand.u32 1, %s810_s17  }
   0xe   : > { %p899_p11 = por %p142_p7, %p60_p0  ;;  %p903_p12 = por %p148_p8, %p66_p3 }
   0xf   : > { %s610_s30 = sshll.u32 %s814_s18, 9  ;;  %s595_s5 = sshll.u32 %s175_s29, 5 }
  0x10   : > { %s1034_s27 = scalar_select %p899_p11, 1, 0 }
  0x11   : > { %s1035_s28 = scalar_select %p903_p12, 1, 0 }
  0x12   : > { %s912_s8 = scalar_lea.hbm %s1027_s1, %s610_s30  ;;  %s179_s9 = scalar_lea.vmem [#allocation2], %s595_s5 }
  0x13   : > { %s186_s10 = sshll.u32 %s179_s9, 4  ;;  %p916_p13 = pnand %p667_p10, %p888_p5  ;;  %s920_s10 = int_to_ptr.vmem [resolvable:$true] %s186_s10 }
  0x14   : > { %s922_s12 = scalar_lea.sflag [#allocation3], %s175_s29  ;;  %s718_s13 = scalar_lea.hbm %s912_s8, 512 }
  0x15   : > { %p719_p0 = scmp.ne.s32.totalorder %s912_s8, %s718_s13  ;;  %p720_p1 = pneg %p916_p13 }
  0x16   : > { %s723_s22 = scalar_lea.hbm %s1027_s1, 1024  ;;  %p724_p4 = scmp.lt.u32.totalorder %s912_s8, %s1027_s1 }
  0x17   : > { %p721_p2 = pnand %p720_p1, %p719_p0  ;;  %p725_p5 = scmp.lt.u32.totalorder %s723_s22, %s718_s13 }
  0x18   : > { %p727_p8 = scmp.lt.u32.totalorder %s718_s13, %s912_s8 }
  0x19   : > { %p722_p3 = pneg %p721_p2  ;;  %p726_p7 = por %p725_p5, %p724_p4 }
  0x1b   : > { %p728_p10 = por %p727_p8, %p726_p7 }
  0x1d   : > { %p729_p9 = pnand %p728_p10, %p722_p3 }
  0x1f   : > { %732 = shalt.err (!%p729_p9)
}
  0x20   : > { %s733_s29 = scalar_lea.vmem %s920_s10, 512  ;;  %s816_s30 = smov [#allocation2]  }
  0x21   : > { %p734_p0 = scmp.ne.s32.totalorder %s920_s10, %s733_s29  ;;  %s738_s5 = sshll.u32 %s816_s30, 4  ;;  %s739_s5 = int_to_ptr.vmem [resolvable:$false] %s738_s5 }
  0x22   : > { %s740_s6 = scalar_lea.vmem %s739_s5, 1024  ;;  %p741_p11 = scmp.lt.s32.totalorder %s920_s10, %s739_s5 }
  0x23   : > { %p736_p2 = pnand %p734_p0, %p720_p1  ;;  %p742_p4 = scmp.lt.s32.totalorder %s740_s6, %s733_s29 }
  0x25   : > { %p737_p12 = pneg %p736_p2  ;;  %p743_p5 = por %p742_p4, %p741_p11 }
  0x27   : > { %p744_p7 = pnand %p743_p5, %p737_p12 }
  0x29   : > { %747 = shalt.err (!%p744_p7)
}
  0x2a   : > { %s817_s7 = smov 128   ;;  %s818_s9 = smov 8  }
  0x2b   : > { %662 = dma.hbm_to_vmem [thread:$0]  (!%p916_p13), %s912_s8, 512, %s920_s10, %s922_s12, %s817_s7, %s817_s7, %s818_s9  }
  0x2c   : > { %p598_p9 = scmp.ge.s32.totalorder %s814_s18, 1  ;;  %p208_p1 = scmp.lt.s32.totalorder %s814_s18, 3 }
  0x2e   : > { %p209_p3 = pnand %p598_p9, %p208_p1 }
  0x2f   : > { %s953_s13 = sand.u32 (!%p209_p3), 1, %s806_s16  }
  0x30   : > { %212 = sbr.rel (%p209_p3) target bundleno = 643 (0x283), region = 36  ;;  %s599_s14 = sshll.u32 (!%p209_p3), %s953_s13, 5 }
  0x31   : > { %s215_s20 = scalar_lea.sflag (!%p209_p3), [#allocation3], %s953_s13  ;;  %s218_s22 = scalar_lea.vmem (!%p209_p3), [#allocation2], %s599_s14 }
  0x37   : > { %793 = dma.done.wait (%p892_p6), %s215_s20, 512  }
  0x38   : > { %795 = vsyncadd (%p892_p6), %s215_s20, 4294966784  ;;  %p255_p11 = scmp.lt.s32.totalorder %s870_s19, 1  ;;  %v819_v0 = vmov 0.0|0.0   ;;  %vm820_vm0 = vmmov 0   ;;  %v821_v1 = vmov 0.0   ;;  %v822_v2 = vmov 0  }
  0x39   : > { %649 = vmatprep.subr.bf16.mxu1 %v819_v0  ;;  %640 = vmatprep.mubr.msk.f32.mxu1 %vm820_vm0, %v821_v1  ;;  %v267_v3 = vld [vmem:[%s218_s22] sm:$0xff]  ;;  %v268_v4 = vld [vmem:[%s218_s22 + $0x8] sm:$0xff]  ;;  %v269_v5 = vld [vmem:[%s218_s22 + $0x10] sm:$0xff]  ;;  %vm353_vm1 = vcmask 257024   ;;  %vm278_vm2 = vcmask 261120   ;;  %vm459_vm7 = vcmask 1043456  }
  0x3a   : > { %s256_s8 = scalar_select %p255_p11, %s870_s19, 1  ;;  %643 = vmatprep.subr.bf16.mxu0 %v819_v0  ;;  %629 = vmatprep.mubr.msk.f32.mxu0 %vm820_vm0, %v821_v1  ;;  %v364_v6 = vmul.f32 %v267_v3, %v267_v3  ;;  %v365_v7 = vmul.f32 %v268_v4, %v268_v4  ;;  %v270_v8 = vld [vmem:[%s218_s22 + $0x18] sm:$0xff]  ;;  %v366_v9 = vmul.f32 %v269_v5, %v269_v5 }
  0x3b   : > { %707 = vset.pattern.permute.xlu0 %v822_v2  ;;  %v644_v11 = vpack.c.bf16 %v268_v4, %v267_v3  ;;  %v367_v12 = vmul.f32 %v270_v8, %v270_v8  ;;  %v647_v15 = vpack.c.bf16 %v270_v8, %v269_v5  ;;  %s600_s7 = sshll.u32 %s953_s13, 2  ;;  %s607_s9 = sshll.u32 %s870_s19, 6 }
  0x3c   : > { %s963_s10 = sshll.u32 %s256_s8, 2  ;;  %v650_v14 = vpack.c.bf16 %v365_v7, %v364_v6  ;;  %s254_s14 = scalar_lea.vmem [#allocation5], %s600_s7 }
  0x3d   : > { %s266_s26 = scalar_lea.vmem %s1029_s3, %s963_s10  ;;  %s262_s29 = scalar_lea.vmem %s1028_s2, %s963_s10  ;;  %645 = vmatpush3.bf16.msra.mxu0 %v644_v11  ;;  %v653_v18 = vpack.c.bf16 %v367_v12, %v366_v9 }
  0x3e   : > { %v273_v10 = vld [vmem:[%s266_s26] sm:$0xf]  ;;  %646 = vmatprep.subr.bf16.mxu0 %v819_v0  ;;  %651 = vmatpush3.bf16.msra.mxu1 %v650_v14  ;;  %s258_s6 = scalar_lea.vmem %s1026_s0, %s963_s10  ;;  %s486_s20 = sshll.u32 %s254_s14, 4  ;;  %s984_s20 = int_to_ptr.vmem [resolvable:$true] %s486_s20 }
  0x3f   : > { %v274_v13 = vmul.f32 0.9, %v273_v10  ;;  %v271_v16 = vld [vmem:[%s262_s29] sm:$0xf]  ;;  %652 = vmatprep.subr.bf16.mxu1 %v819_v0  ;;  %s982_s10 = scalar_lea.hbm %s1030_s4, %s607_s9  ;;  %s473_s11 = scalar_lea.sflag [#allocation4], %s953_s13 }
  0x40   : > { %v272_v24 = vld [vmem:[%s258_s6] sm:$0xf]  ;;  %s748_s12 = scalar_lea.vmem %s984_s20, 64  ;;  %p1037_p12 = scmp.ne.s32.totalorder %s1034_s27, 0 }
  0x41   : > { %v275_v17 = vadd.f32 0.1, %v274_v13  ;;  %648 = vmatpush3.bf16.msra.mxu0 %v647_v15  ;;  %p749_p6 = scmp.ne.s32.totalorder %s984_s20, %s748_s12  ;;  %s823_s19 = smov [#allocation5]  }
  0x42   : > { %654 = vmatpush3.bf16.msra.mxu1 %v653_v18  ;;  %s752_s26 = sshll.u32 %s823_s19, 4  ;;  %s753_s26 = int_to_ptr.vmem [resolvable:$false] %s752_s26 }
  0x43   : > { %v276_v19 = vmul.f32 %v275_v17, %v271_v16  ;;  %v368_v20 = vmul.f32 %v275_v17, %v275_v17  ;;  %p750_p13 = pnand %p749_p6, %p1037_p12  ;;  %s754_s23 = scalar_lea.vmem %s753_s26, 128 }
  0x44   : > { %p755_p10 = scmp.lt.s32.totalorder %s984_s20, %s753_s26  ;;  %p756_p0 = scmp.lt.s32.totalorder %s754_s23, %s748_s12 }
  0x45   : > { %v277_v21 = vmul.f32 %v276_v19, %v275_v17  ;;  %v352_v22 = vmul.f32 %v276_v19, %v276_v19  ;;  %641 = vmatmul.mubr.msk.f32.vlgmr.msra.gmra.mrb[0].mxu1 %vm278_vm2, %v368_v20  ;;  %p751_p8 = pneg %p750_p13 }
  0x46   : > { %p757_p2 = por %p756_p0, %p755_p10 }
  0x47   : > { %630 = vmatmul.mubr.msk.f32.vlgmr.msra.gmra.mrb[0].mxu0 %vm278_vm2, %v277_v21  ;;  %v354_v23 = vsel %vm353_vm1, %v352_v22, 0.0 }
  0x48   : > { %355 = vadd.xlane.f32.xlu0 %v354_v23  ;;  %p758_p4 = pnand %p757_p2, %p751_p8 }
  0x5e   : > { %455 = vperm.xlu0 %707, %v272_v24  }
  0xd5   : > { %v356_v25 = vpop.xlane.xlu0 %355 }
  0xd6   : > { %708 = vrsqrt.f32 %v356_v25  ;;  %vm359_vm3 = vcmp.eq.f32.partialorder %v356_v25, inf  ;;  %v362_v33 = vand.u32 2147483648, %v356_v25  ;;  %vm361_vm4 = vcmp.eq.f32.partialorder %v356_v25, 0.0 }
  0xdd   : > { %v456_v43 = vpop.permute.xlu0 %455 }
  0xe0   : > { %v709_v30 = vpop.eup %708 }
  0xe1   : > { %v358_v31 = vmul.f32 %v709_v30, %v356_v25 }
  0xe3   : > { %v360_v34 = vsel %vm359_vm3, %v356_v25, %v358_v31 }
  0xe4   : > { %v363_v38 = vsel %vm361_vm4, %v362_v33, %v360_v34 }
 0x118   : > { %v438_v28 = vpop.f32.mrb[0].mxu1 }
 0x119   : > { %710 = vrsqrt.f32 %v438_v28  ;;  %v642_v29 = vpop.f32.mrb[1].mxu1  ;;  %vm444_vm5 = vcmp.eq.f32.partialorder %v438_v28, inf  ;;  %v447_v36 = vand.u32 2147483648, %v438_v28  ;;  %vm446_vm6 = vcmp.eq.f32.partialorder %v438_v28, 0.0 }
 0x11a   : > { %v348_v26 = vpop.f32.mrb[0].mxu0 }
 0x11b   : > { %v631_v27 = vpop.f32.mrb[1].mxu0 }
 0x123   : > { %v711_v32 = vpop.eup %710 }
 0x124   : > { %v443_v35 = vmul.f32 %v711_v32, %v438_v28 }
 0x126   : > { %v445_v37 = vsel %vm444_vm5, %v438_v28, %v443_v35 }
 0x127   : > { %v448_v39 = vsel %vm446_vm6, %v447_v36, %v445_v37 }
 0x128   : > { %v449_v40 = vmul.f32 %v448_v39, %v363_v38 }
 0x12a   : > { %v450_v41 = vadd.f32 1e-06, %v449_v40 }
 0x12c   : > { %712 = vrcp.f32 %v450_v41 }
 0x136   : > { %v713_v42 = vpop.eup %712 }
 0x137   : > { %v452_v44 = vmul.f32 %v713_v42, %v348_v26 }
 0x139   : > { %v458_v45 = vmul.f32 %v456_v43, %v452_v44 }
 0x13b   : > { %v460_v46 = vsel %vm459_vm7, %v458_v45, -inf }
 0x13c   : > { %461 = vmax.xlane.f32.xlu1 %v460_v46 }
 0x1c9   : > { %v462_v47 = vpop.xlane.xlu1 %461 }
 0x1ca   : > { %v463_v48 = vsub.f32 %v458_v45, %v462_v47 }
 0x1cc   : > { %v464_v49 = vmul.f32 1.442695, %v463_v48 }
 0x1ce   : > { %714 = vpow2.f32 %v464_v49 }
 0x1d8   : > { %v715_v50 = vpop.eup %714 }
 0x1d9   : > { %v466_v51 = vsel %vm459_vm7, %v715_v50, 0.0 }
 0x1da   : > { %467 = vadd.xlane.f32.xlu1 %v466_v51 }
 0x267   : > { %v468_v52 = vpop.xlane.xlu1 %467 }
 0x268   : > { %716 = vrcp.f32 %v468_v52 }
 0x272   : > { %v717_v53 = vpop.eup %716 }
 0x273   : > { %v470_v54 = vmul.f32 %v717_v53, %v715_v50 }
 0x275   : > { %471 = vst [vmem:[%s254_s14] sm:$0xf] %v470_v54 }
 0x276   : > { %761 = shalt.err (!%p758_p4)
}
 0x277   : > { %s762_s13 = scalar_lea.hbm %s982_s10, 64  ;;  %s766_s30 = scalar_lea.hbm %s1030_s4, 128 }
 0x278   : > { %p763_p5 = scmp.ne.s32.totalorder %s982_s10, %s762_s13  ;;  %p767_p1 = scmp.lt.u32.totalorder %s982_s10, %s1030_s4 }
 0x279   : > { %p768_p3 = scmp.lt.u32.totalorder %s766_s30, %s762_s13  ;;  %p770_p6 = scmp.lt.u32.totalorder %s762_s13, %s982_s10 }
 0x27a   : > { %p764_p7 = pnand %p763_p5, %p1037_p12 }
 0x27b   : > { %p769_p11 = por %p768_p3, %p767_p1 }
 0x27c   : > { %p765_p9 = pneg %p764_p7 }
 0x27d   : > { %p771_p13 = por %p770_p6, %p769_p11 }
 0x27f   : > { %p772_p8 = pnand %p771_p13, %p765_p9 }
 0x281   : > { %775 = shalt.err (!%p772_p8)
}
 0x282   : > { %657 = dma.vmem_to_hbm [thread:$0]  (%p1037_p12), %s984_s20, 64, %s982_s10, %s473_s11  }
 0x283 PF: > { %s498_s7 = sand.u32 1, %s802_s15   ;;  %p1038_p10 = scmp.ne.s32.totalorder %s1035_s28, 0 }
 0x284   : > { %p1039_p0 = scmp.ge.s32.totalorder %s814_s18, 2  ;;  %s499_s9 = scalar_lea.sflag [#allocation4], %s498_s7 }
 0x286   : > { %p664_p2 = pnand %p1039_p0, %p1038_p10 }
 0x288   : > { %797 = dma.done.wait (!%p664_p2), %s499_s9, 64  }
 0x289   : > { %799 = vsyncadd (!%p664_p2), %s499_s9, 4294967232  ;;  %p17_p4 = scmp.ge.s32.totalorder %s874_s21, 4   ;;  %s1040_s15 = smov %s806_s16 }
 0x28a   : > { %s1041_s16 = smov %s810_s17  ;;  %s1042_s17 = smov %s886_s24 }
 0x28b   : > { %s1043_s18 = smov %s874_s21  ;;  %19 = sbr.rel (!%p17_p4) target bundleno = 5 (0x5), region = 90 }
 0x292   :  { %504 = vsyncpa [#allocation3], 1 }
 0x293   :  { %506 = vsyncpa [#allocation3 + $0x1], 1 }
 0x294   :  { %507 = vsyncpa [#allocation4], 1 }
 0x295   :  { %509 = vsyncpa [#allocation4 + $0x1], 1 }

</bundles_post_ra>
